<compile_context>
chip_gen: v6e
topology: v6e:2x2x1
jax: 0.10.0
libtpu: 0.0.40
codegen_flags: <defaults>
</compile_context>

<pallas_src>
import functools
import math

import jax
import jax.numpy as jnp
from jax.experimental import pallas as pl
from jax.experimental.pallas import tpu as pltpu


def se_kernel(x_ref, w1_ref, w2_ref, o_ref, *, fold, inv_l):
    # x_ref / o_ref: (BB, L//fold, fold*C)  lane-dense slab
    # w1_ref: (C, H), w2_ref: (H, C)
    x = x_ref[...]
    bb, _, kc = x.shape
    c = kc // fold

    # squeeze: per-(batch, channel) mean over the sequence axis.
    # Sum over the folded-sequence (sublane) axis in f32, then collapse the
    # `fold` groups packed along the lane dim with static lane slices.
    col_sum = jnp.sum(x.astype(jnp.float32), axis=1)          # (BB, fold*C)
    y = col_sum[:, :c]
    for m in range(1, fold):                                  # static unroll
        y = y + col_sum[:, m * c:(m + 1) * c]
    y = y * inv_l                                             # (BB, C)

    # excitation MLP: Linear(C->H) + ReLU + Linear(H->C) + Sigmoid
    h = jnp.dot(y, w1_ref[...].astype(jnp.float32),
                preferred_element_type=jnp.float32)           # (BB, H)
    h = jnp.maximum(h, 0.0)
    s = jnp.dot(h, w2_ref[...].astype(jnp.float32),
                preferred_element_type=jnp.float32)           # (BB, C)
    s = jax.nn.sigmoid(s)

    # scale: replicate the gate across the fold groups (lane dim) and
    # broadcast over the folded sequence axis.
    s_wide = jnp.tile(s, (1, fold))                           # (BB, fold*C)
    o_ref[...] = (x.astype(jnp.float32) * s_wide[:, None, :]).astype(o_ref.dtype)


def se_layer(x, w1, w2):
    """x: (B, L, C). w1: (C, C//r). w2: (C//r, C). Returns (B, L, C)."""
    B, L, C = x.shape
    H = w1.shape[1]
    itemsize = jnp.dtype(x.dtype).itemsize

    # ---- lane-dense folding: make the last block dim a multiple of 128 ----
    fold = 1
    if C % 128 != 0:
        cand = math.lcm(C, 128) // C
        if cand <= L and L % cand == 0:
            fold = cand
    Lk = L // fold
    KC = fold * C

    # ---- batch packing: largest divisor of B that fits the VMEM budget ----
    slab = L * C * itemsize                        # one batch, input OR output
    weight_bytes = (w1.size * jnp.dtype(w1.dtype).itemsize
                    + w2.size * jnp.dtype(w2.dtype).itemsize)
    buf_budget = 40 << 20                          # conservative for v7x VMEM
    bb = 1
    for d in range(1, B + 1):
        if B % d == 0 and 4 * d * slab + 2 * weight_bytes <= buf_budget:
            bb = d
    # TODO(synk): if a single-batch slab itself exceeds the budget (huge L*C on
    # v7x's 64 MiB VMEM), switch to a two-pass L-tiled variant (pass 1:
    # accumulate per-channel sums + compute the gate; pass 2: tiled multiply).

    x_folded = x.reshape(B, Lk, KC)

    kernel = functools.partial(se_kernel, fold=fold, inv_l=1.0 / L)

    # explicit VMEM budget: double-buffered in+out slabs + weights + slack
    needed = 4 * bb * slab + 4 * weight_bytes + (2 << 20)
    vmem_limit = int(min(max(needed, 16 << 20), 48 << 20))

    cost = pl.CostEstimate(
        flops=int(2 * B * L * C + 4 * B * C * H),
        transcendentals=int(B * C),
        bytes_accessed=int(2 * B * L * C * itemsize + weight_bytes),
    )

    out = pl.pallas_call(
        kernel,
        out_shape=jax.ShapeDtypeStruct((B, Lk, KC), x.dtype),
        grid_spec=pltpu.PrefetchScalarGridSpec(
            num_scalar_prefetch=0,
            grid=(B // bb,),
            in_specs=[
                pl.BlockSpec((bb, Lk, KC), lambda i: (i, 0, 0)),
                pl.BlockSpec((C, H), lambda i: (0, 0)),
                pl.BlockSpec((H, C), lambda i: (0, 0)),
            ],
            out_specs=pl.BlockSpec((bb, Lk, KC), lambda i: (i, 0, 0)),
        ),
        compiler_params=pltpu.CompilerParams(
            dimension_semantics=("parallel",),
            vmem_limit_bytes=vmem_limit,
        ),
        cost_estimate=cost,
    )(x_folded, w1, w2)

    return out.reshape(B, L, C)


def se_reference(x, w1, w2):
    # pure-JAX reference mirroring the PyTorch forward
    y = jnp.mean(x.astype(jnp.float32), axis=1)    # (B, C)  avg over L
    h = jnp.maximum(y @ w1.astype(jnp.float32), 0.0)
    s = jax.nn.sigmoid(h @ w2.astype(jnp.float32))
    return (x.astype(jnp.float32) * s[:, None, :]).astype(x.dtype)


if __name__ == "__main__":
    B, L, C = 2, 8, 32
    reduction = 16
    H = C // reduction  # 2

    key = jax.random.PRNGKey(0)
    kx, k1, k2 = jax.random.split(key, 3)
    x = jax.random.normal(kx, (B, L, C), dtype=jnp.float32)
    # PyTorch Linear(channel, channel//r) stores weight (H, C); we keep the
    # transposed (C, H) / (H, C) forms for direct y @ W matmuls.
    w1 = jax.random.normal(k1, (C, H), dtype=jnp.float32) * 0.1
    w2 = jax.random.normal(k2, (H, C), dtype=jnp.float32) * 0.1

    out = se_layer(x, w1, w2)
    out = jax.block_until_ready(out)

    ref = se_reference(x, w1, w2)
    assert out.shape == (B, L, C)
    assert jnp.allclose(out, ref, atol=1e-5, rtol=1e-5), "mismatch vs reference"
    print("KERNEL_OK")
</pallas_src>

<mosaic_0001>
module attributes {stable_mosaic.version = 11 : i64} {
  func.func @se_kernel(%arg0: i32, %arg1: memref<2x2x128xf32, #tpu.memory_space<vmem>>, %arg2: memref<32x2xf32, #tpu.memory_space<vmem>>, %arg3: memref<2x32xf32, #tpu.memory_space<vmem>>, %arg4: memref<2x2x128xf32, #tpu.memory_space<vmem>>) attributes {dimension_semantics = [#tpu.dimension_semantics<parallel>], iteration_bounds = array<i64: 1>, scalar_prefetch = 0 : i64, scratch_operands = 0 : i64, tpu.core_type = #tpu.core_type<tc>, window_params = [{transform_indices = @transform_0, window_bounds = array<i64: 2, 2, 128>}, {pipeline_mode = #tpu.pipeline_mode<synchronous>, transform_indices = @transform_1, window_bounds = array<i64: 32, 2>}, {pipeline_mode = #tpu.pipeline_mode<synchronous>, transform_indices = @transform_2, window_bounds = array<i64: 2, 32>}, {transform_indices = @transform_3, window_bounds = array<i64: 2, 2, 128>}]} {
    %c0 = arith.constant 0 : index
    %c0_0 = arith.constant 0 : index
    %c0_1 = arith.constant 0 : index
    %0 = vector.load %arg1[%c0, %c0_0, %c0_1] : memref<2x2x128xf32, #tpu.memory_space<vmem>>, vector<2x2x128xf32>
    %cst = arith.constant dense<0.000000e+00> : vector<2x128xf32>
    %1 = vector.multi_reduction <add>, %0, %cst [1] : vector<2x2x128xf32> to vector<2x128xf32>
    %2 = vector.extract_strided_slice %1 {offsets = [0, 0], sizes = [2, 32], strides = [1, 1]} : vector<2x128xf32> to vector<2x32xf32>
    %3 = vector.extract_strided_slice %1 {offsets = [0, 32], sizes = [2, 32], strides = [1, 1]} : vector<2x128xf32> to vector<2x32xf32>
    %4 = arith.addf %2, %3 : vector<2x32xf32>
    %5 = vector.extract_strided_slice %1 {offsets = [0, 64], sizes = [2, 32], strides = [1, 1]} : vector<2x128xf32> to vector<2x32xf32>
    %6 = arith.addf %4, %5 : vector<2x32xf32>
    %7 = vector.extract_strided_slice %1 {offsets = [0, 96], sizes = [2, 32], strides = [1, 1]} : vector<2x128xf32> to vector<2x32xf32>
    %8 = arith.addf %6, %7 : vector<2x32xf32>
    %cst_2 = arith.constant 1.250000e-01 : f32
    %9 = vector.broadcast %cst_2 : f32 to vector<2x32xf32>
    %10 = arith.mulf %8, %9 : vector<2x32xf32>
    %c0_3 = arith.constant 0 : index
    %c0_4 = arith.constant 0 : index
    %11 = vector.load %arg2[%c0_3, %c0_4] : memref<32x2xf32, #tpu.memory_space<vmem>>, vector<32x2xf32>
    %cst_5 = arith.constant dense<0.000000e+00> : vector<2x2xf32>
    %12 = tpu.matmul %10, %11, %cst_5 {dimension_numbers = #tpu.dot_dimension_numbers<[1], [0], [0], [1], [0, 0, 1, 1], [], []>} : vector<2x32xf32>, vector<32x2xf32>, vector<2x2xf32> -> vector<2x2xf32>
    %cst_6 = arith.constant 0.000000e+00 : f32
    %13 = vector.broadcast %cst_6 : f32 to vector<2x2xf32>
    %14 = arith.maximumf %12, %13 : vector<2x2xf32>
    %c0_7 = arith.constant 0 : index
    %c0_8 = arith.constant 0 : index
    %15 = vector.load %arg3[%c0_7, %c0_8] : memref<2x32xf32, #tpu.memory_space<vmem>>, vector<2x32xf32>
    %cst_9 = arith.constant dense<0.000000e+00> : vector<2x32xf32>
    %16 = tpu.matmul %14, %15, %cst_9 {dimension_numbers = #tpu.dot_dimension_numbers<[1], [0], [0], [1], [0, 0, 1, 1], [], []>} : vector<2x2xf32>, vector<2x32xf32>, vector<2x32xf32> -> vector<2x32xf32>
    %17 = arith.negf %16 : vector<2x32xf32>
    %18 = math.exp %17 : vector<2x32xf32>
    %cst_10 = arith.constant 1.000000e+00 : f32
    %19 = vector.broadcast %cst_10 : f32 to vector<2x32xf32>
    %20 = arith.addf %19, %18 : vector<2x32xf32>
    %21 = arith.divf %19, %20 : vector<2x32xf32>
    %22 = tpu.concatenate %21, %21, %21, %21 in 1 : vector<2x32xf32>, vector<2x32xf32>, vector<2x32xf32>, vector<2x32xf32> -> vector<2x128xf32>
    %23 = vector.shape_cast %22 : vector<2x128xf32> to vector<2x1x128xf32>
    %24 = vector.broadcast %23 : vector<2x1x128xf32> to vector<2x2x128xf32>
    %25 = arith.mulf %0, %24 : vector<2x2x128xf32>
    %c0_11 = arith.constant 0 : index
    %c0_12 = arith.constant 0 : index
    %c0_13 = arith.constant 0 : index
    %26 = vector.load %arg4[%c0_11, %c0_12, %c0_13] : memref<2x2x128xf32, #tpu.memory_space<vmem>>, vector<2x2x128xf32>
    tpu.vector_store %arg4[%c0_11, %c0_12, %c0_13], %25 {strides = array<i32>} : memref<2x2x128xf32, #tpu.memory_space<vmem>>, vector<2x2x128xf32>,
    return
  }
  func.func @transform_0(%arg0: i32) -> (i32, i32, i32) {
    %c0_i32 = arith.constant 0 : i32
    %c0_i32_0 = arith.constant 0 : i32
    %c0_i32_1 = arith.constant 0 : i32
    return %arg0, %c0_i32, %c0_i32_0 : i32, i32, i32
  }
  func.func @transform_1(%arg0: i32) -> (i32, i32) {
    %c0_i32 = arith.constant 0 : i32
    %c0_i32_0 = arith.constant 0 : i32
    %c0_i32_1 = arith.constant 0 : i32
    return %c0_i32, %c0_i32_0 : i32, i32
  }
  func.func @transform_2(%arg0: i32) -> (i32, i32) {
    %c0_i32 = arith.constant 0 : i32
    %c0_i32_0 = arith.constant 0 : i32
    %c0_i32_1 = arith.constant 0 : i32
    return %c0_i32, %c0_i32_0 : i32, i32
  }
  func.func @transform_3(%arg0: i32) -> (i32, i32, i32) {
    %c0_i32 = arith.constant 0 : i32
    %c0_i32_0 = arith.constant 0 : i32
    %c0_i32_1 = arith.constant 0 : i32
    return %arg0, %c0_i32, %c0_i32_0 : i32, i32, i32
  }
}

</mosaic_0001>

<bundles_post_ra>
// kernel: tpu_custom_call.1
= control target key start
LH: loop header
LB: loop body
LE: loop exit
PB: predicated region body
PF: predicated region fallthrough
CT: control target
= control target key end

     0   :  { %vm17_vm0 = vcmask 1041408   ;;  %s432_s0 = inlined_call_operand.vmem [shape: f32[2,2,128], index: 0, kind: input, shape index: {}]   ;;  %s433_s1 = inlined_call_operand.vmem [shape: f32[32,2], index: 1, kind: input, shape index: {}]   ;;  %s434_s2 = inlined_call_operand.vmem [shape: f32[2,32], index: 2, kind: input, shape index: {}]   ;;  %s435_s3 = inlined_call_operand.hbm [shape: f32[2,2,128], index: 3, kind: output, shape index: {}]  }
   0x1   :  { %v387_v0 = vld [vmem:[%s432_s0 + $0x2] sm:$0x3]  ;;  %v394_v2 = vld [vmem:[%s432_s0] sm:$0x3] }
   0x2   :  { %v25_v1 = vsel %vm17_vm0, %v387_v0, 0.0 }
   0x3   :  { %8 = vsyncpa [#allocation3], 0  ;;  %v26_v3 = vrot.slane %v25_v1, 4  ;;  %v18_v4 = vsel %vm17_vm0, %v394_v2, 0.0  ;;  %v356_v9 = vmov 0.0   ;;  %v63_v12 = vld [vmem:[%s433_s1 + $0x18] sm:$0xff]  ;;  %v246_v49 = vlaneseq }
   0x4   :  { %v19_v5 = vrot.slane %v18_v4, 4  ;;  %306 = vmatprep.subr.mxu0 %v356_v9  ;;  %317 = vmatprep.subr.mxu1 %v356_v9  ;;  %v62_v15 = vld [vmem:[%s433_s1 + $0x10] sm:$0xff]  ;;  %v61_v18 = vld [vmem:[%s433_s1 + $0x8] sm:$0xff]  ;;  %v60_v19 = vld [vmem:[%s433_s1] sm:$0xff]  ;;  %s357_s23 = smov 64   ;;  %s358_s24 = smov 96  }
   0x5   :  { %v27_v6 = vadd.f32 %v26_v3, %v25_v1  ;;  %307 = vmatpush3.msra.mxu0 %v63_v12  ;;  %vm359_vm1 = vmmov 0   ;;  %s360_s25 = smov 32   ;;  %vm67_vm2 = vcmask 1041409   ;;  %vm69_vm3 = vcmask 261120   ;;  %v143_v37 = vld [vmem:[%s434_s2] sm:$0x3] }
   0x6   :  { %v20_v7 = vadd.f32 %v19_v5, %v18_v4  ;;  %308 = vmatprep.subr.mxu0 %v356_v9  ;;  %314 = vmatprep.mubr.msk.f32.mxu0 %vm359_vm1, %v356_v9  ;;  %vm144_vm4 = vcmask 15360   ;;  %v361_v47 = vmov 1966171168   ;;  %v247_v51 = vshrl.u32 %v246_v49, 7  ;;  %s362_s2 = smov [#allocation2]  }
   0x7   :  { %v28_v8 = vrot.slane %v27_v6, 2  ;;  %309 = vmatpush3.msra.mxu0 %v62_v15  ;;  %319 = vmatprep.mubr.msk.f32.mxu1 %vm359_vm1, %v356_v9  ;;  %v244_v48 = vunpack.c.l.s4 %v361_v47  ;;  %vm238_vm5 = vcmask 523264   ;;  %vm240_vm6 = vcmask 785408   ;;  %s284_s27 = sshll.u32 %s362_s2, 4  ;;  %s285_s27 = int_to_ptr.vmem [resolvable:$true] %s284_s27 }
   0x8   :  { %v21_v10 = vrot.slane %v20_v7, 2  ;;  %310 = vmatprep.subr.mxu0 %v356_v9  ;;  %318 = vmatpush3.msk.msra.mxu1 %vm17_vm0, %v143_v37  ;;  %v267_v59 = vsub.s32 0, %v247_v51  ;;  %s334_s28 = scalar_lea.vmem %s285_s27, 64  ;;  %p339_p1 = scmp.lt.s32.totalorder %s285_s27, %s285_s27 }
   0x9   :  { %v29_v11 = vadd.f32 %v28_v8, %v27_v6  ;;  %311 = vmatpush3.msra.mxu0 %v61_v18  ;;  %v245_v50 = vunpack.c.0.s8 %v244_v48  ;;  %p335_p0 = scmp.ne.s32.totalorder %s285_s27, %s334_s28  ;;  %p340_p2 = scmp.lt.s32.totalorder %s334_s28, %s334_s28 }
   0xa   :  { %v22_v13 = vadd.f32 %v21_v10, %v20_v7  ;;  %312 = vmatprep.subr.mxu0 %v356_v9 }
   0xb   :  { %v30_v14 = vrot.slane %v29_v11, 1  ;;  %313 = vmatpush3.msra.mxu0 %v60_v19  ;;  %v248_v55 = vsub.s32 %v245_v50, %v247_v51  ;;  %p341_p3 = por %p340_p2, %p339_p1 }
   0xc   :  { %v23_v16 = vrot.slane %v22_v13, 1 }
   0xd   :  { %v31_v17 = vadd.f32 %v30_v14, %v29_v11  ;;  %p342_p4 = pnand %p341_p3, %p335_p0 }
   0xe   :  { %v24_v20 = vadd.f32 %v23_v16, %v22_v13 }
   0xf   :  { %44 = vrot.lane.b32.xlu1 %v31_v17, %s357_s23  ;;  %36 = vrot.lane.b32.xlu0 %v31_v17, %s358_s24 }
  0x13   :  { %42 = vrot.lane.b32.xlu1 %v24_v20, %s357_s23  ;;  %34 = vrot.lane.b32.xlu0 %v24_v20, %s358_s24 }
  0x17   :  { %50 = vrot.lane.b32.xlu1 %v24_v20, %s360_s25  ;;  %52 = vrot.lane.b32.xlu0 %v31_v17, %s360_s25 }
  0x81   :  { %v45_v21 = vpop.permute.xlu1 %44  ;;  %v37_v22 = vpop.permute.xlu0 %36 }
  0x82   :  { %v41_v23 = vadd.f32 %v37_v22, %v31_v17 }
  0x84   :  { %v49_v28 = vadd.f32 %v45_v21, %v41_v23 }
  0x85   :  { %v43_v24 = vpop.permute.xlu1 %42  ;;  %v35_v25 = vpop.permute.xlu0 %34 }
  0x86   :  { %v40_v26 = vadd.f32 %v35_v25, %v24_v20 }
  0x88   :  { %v48_v27 = vadd.f32 %v43_v24, %v40_v26 }
  0x89   :  { %v51_v29 = vpop.permute.xlu1 %50  ;;  %v53_v30 = vpop.permute.xlu0 %52 }
  0x8a   :  { %v56_v31 = vadd.f32 %v51_v29, %v48_v27  ;;  %v57_v32 = vadd.f32 %v53_v30, %v49_v28 }
  0x8c   :  { %v59_v33 = vmul.f32 0.125, %v57_v32  ;;  %v58_v34 = vmul.f32 0.125, %v56_v31 }
  0x8e   :  { %v66_v35 = vrot.slane %v59_v33, 7 }
  0x90   :  { %v68_v36 = vsel %vm67_vm2, %v66_v35, %v58_v34 }
  0x91   :  { %315 = vmatmul.mubr.msk.f32.vlgmr.msra.gmra.mxu0 %vm69_vm3, %v68_v36 }
 0x151   :  { %v138_v38 = vpop.f32.mrf.mxu0 }
 0x152   :  { %v142_v39 = vmax.f32 %v138_v38, 0.0 }
 0x153   :  { %v316_v40 = vpop.f32.mrf.mxu0 }
 0x154   :  { %320 = vmatmul.mubr.msk.f32.vlgmr.msra.gmra.mxu1 %vm144_vm4, %v142_v39 }
 0x214   :  { %v217_v41 = vpop.f32.mrf.mxu1 }
 0x215   :  { %v298_v42 = vmul.f32 -1.442695, %v217_v41 }
 0x216   :  { %v321_v43 = vpop.f32.mrf.mxu1 }
 0x217   :  { %330 = vpow2.f32 %v298_v42 }
 0x224   :  { %v331_v44 = vpop.eup %330 }
 0x225   :  { %v224_v45 = vadd.f32 1.0, %v331_v44 }
 0x227   :  { %332 = vrcp.f32 %v224_v45 }
 0x234   :  { %v333_v46 = vpop.eup %332 }
 0x235   :  { %231 = vrot.lane.b32.xlu1 %v333_v46, %s357_s23  ;;  %228 = vrot.lane.b32.xlu0 %v333_v46, %s360_s25 }
 0x239   :  { %234 = vrot.lane.b32.xlu0 %v333_v46, %s358_s24 }
 0x2a7   :  { %v229_v52 = vpop.permute.xlu0 %228  ;;  %v232_v53 = vpop.permute.xlu1 %231 }
 0x2a8   :  { %v237_v54 = vsel %vm69_vm3, %v333_v46, %v229_v52 }
 0x2a9   :  { %v239_v56 = vsel %vm238_vm5, %v237_v54, %v232_v53 }
 0x2ab   :  { %v235_v57 = vpop.permute.xlu0 %234 }
 0x2ac   :  { %v241_v58 = vsel %vm240_vm6, %v239_v56, %v235_v57 }
 0x2ad   :  { %v249_v60 = vrot.slane %v241_v58, %v248_v55 }
 0x2af   :  { %v250_v61 = vcombine.high %v249_v60, %v249_v60  ;;  %v257_v62 = vrot.slane %v249_v60, %v248_v55 }
 0x2b1   :  { %v264_v63 = vrot.slane %v250_v61, %v248_v55  ;;  %v268_v1 = vrot.slane %v257_v62, %v267_v59 }
 0x2b3   :  { %v272_v3 = vrot.slane %v264_v63, %v267_v59  ;;  %v275_v4 = vmul.f32 %v268_v1, %v394_v2 }
 0x2b5   :  { %277 = vst [vmem:[#allocation2] sm:$0x3] %v275_v4  ;;  %v276_v5 = vmul.f32 %v272_v3, %v387_v0 }
 0x2b7   :  { %278 = vst [vmem:[#allocation2 + $0x2] sm:$0x3] %v276_v5 }
 0x2b8   :  { %345 = shalt.err (!%p342_p4)
}
 0x2b9   :  { %s363_s29 = smov 2  }
 0x2ba   :  { %290 = dma.vmem_to_hbm [thread:$0]  %s285_s27, 64, %s435_s3, [#allocation3], %s360_s25, %s360_s25, %s363_s29  }
 0x2bb   :  { %354 = dma.done.wait [#allocation3], 64  }
 0x2bc   :  { %355 = vsyncadd [#allocation3], 4294967232 }
 0x2bd   :  { %294 = vsyncpa [#allocation3], 1 }

</bundles_post_ra>
